<compile_context>
chip_gen: v7x
topology: tpu7x:2x2x1
jax: 0.10.0
libtpu: 0.0.40
codegen_flags: <defaults>
</compile_context>

<pallas_src>
import functools
import math

import jax
import jax.numpy as jnp
from jax import lax
from jax.experimental import pallas as pl
from jax.experimental.pallas import tpu as pltpu


def _round_up(x, m):
    return (x + m - 1) // m * m


def _model_wrapper_kernel(x_ref, wenc_ref, benc_ref, whead_ref, bhead_ref,
                          out_ref, acc_ref, *, normalize: bool):
    """One (batch-tile i, K-tile k) grid step.

    x_ref     : (tb, tk)   compute_dtype  flattened-image tile
    wenc_ref  : (tk, Fp)   compute_dtype  encoder weight tile (pre-transposed, zero-padded)
    benc_ref  : (1, Fp)    f32            encoder bias (zero-padded)
    whead_ref : (Fp, Cp)   f32            head weight (pre-transposed, zero-padded)
    bhead_ref : (1, Cp)    f32            head bias (zero-padded)
    out_ref   : (tb, Cp)   f32            logits tile
    acc_ref   : (tb, Fp)   f32 scratch    feature accumulator (resident across k)
    """
    k = pl.program_id(1)

    @pl.when(k == 0)
    def _():
        acc_ref[...] = jnp.zeros_like(acc_ref)

    # encode_image contraction step on the MXU, f32 accumulation.
    acc_ref[...] += jnp.dot(x_ref[...], wenc_ref[...],
                            preferred_element_type=jnp.float32)

    @pl.when(k == pl.num_programs(1) - 1)
    def _():
        feat = acc_ref[...] + benc_ref[...]              # ".float()" encoder output (f32)
        if normalize:
            # features / ||features||: rsqrt (EUP slot) instead of sqrt + divide.
            # Padded (all-zero) rows would be 0/0 -> guard; padded feature lanes are
            # exactly zero so they do not perturb the norm.
            ssq = jnp.sum(feat * feat, axis=-1, keepdims=True)
            feat = feat * lax.rsqrt(jnp.maximum(ssq, 1e-12))
        logits = jnp.dot(feat, whead_ref[...],
                         preferred_element_type=jnp.float32) + bhead_ref[...]
        out_ref[...] = logits


def prepare_params(w_enc, b_enc, w_head, b_head, *,
                   compute_dtype=jnp.bfloat16, block_k=1024):
    """One-time parameter prep (hoisted out of the per-call path):
       transpose, zero-pad to lane-dense (multiple-of-128) shapes, cast the streamed
       encoder weight to the compute dtype."""
    feature_dim, d_in = w_enc.shape
    num_classes = w_head.shape[0]

    f_pad = _round_up(feature_dim, 128)
    c_pad = _round_up(num_classes, 128)
    tk = min(block_k, _round_up(d_in, 128))
    din_pad = _round_up(d_in, tk)

    wenc_t = jnp.zeros((din_pad, f_pad), compute_dtype)
    wenc_t = wenc_t.at[:d_in, :feature_dim].set(
        jnp.transpose(w_enc).astype(compute_dtype))
    benc = jnp.zeros((1, f_pad), jnp.float32)
    benc = benc.at[0, :feature_dim].set(b_enc.astype(jnp.float32))
    whead_t = jnp.zeros((f_pad, c_pad), jnp.float32)
    whead_t = whead_t.at[:feature_dim, :num_classes].set(
        jnp.transpose(w_head).astype(jnp.float32))
    bhead = jnp.zeros((1, c_pad), jnp.float32)
    bhead = bhead.at[0, :num_classes].set(b_head.astype(jnp.float32))

    meta = dict(d_in=d_in, din_pad=din_pad, feature_dim=feature_dim, f_pad=f_pad,
                num_classes=num_classes, c_pad=c_pad, tk=tk,
                compute_dtype=compute_dtype)
    return (wenc_t, benc, whead_t, bhead), meta


def model_wrapper_forward(images, params, meta, *, normalize=True, block_m=128):
    """images: (B, C, H, W) NCHW.  Returns (B, num_classes) f32 logits."""
    wenc_t, benc, whead_t, bhead = params
    d_in, din_pad = meta["d_in"], meta["din_pad"]
    f_pad, c_pad = meta["f_pad"], meta["c_pad"]
    num_classes = meta["num_classes"]
    tk = meta["tk"]
    compute_dtype = meta["compute_dtype"]

    B = images.shape[0]
    tb = min(block_m, _round_up(max(B, 1), 8))
    b_pad = _round_up(B, tb)

    # Glue: flatten NCHW, cast to compute dtype, zero-pad batch / Din (lane-dense slab).
    x = images.reshape(B, -1).astype(compute_dtype)
    x = jnp.pad(x, ((0, b_pad - B), (0, din_pad - d_in)))

    grid = (b_pad // tb, din_pad // tk)
    kernel = functools.partial(_model_wrapper_kernel, normalize=normalize)

    itemsize = jnp.dtype(compute_dtype).itemsize
    vmem_need = (2 * (tb * tk + tk * f_pad) * itemsize       # double-buffered x / w_enc tiles
                 + tb * f_pad * 4                            # accumulator scratch
                 + 2 * tb * c_pad * 4                        # output (double-buffered)
                 + 2 * (f_pad * c_pad + f_pad + c_pad) * 4)  # head weight + biases
    vmem_limit = int(min(max(2 * vmem_need, 16 * 1024 * 1024), 48 * 1024 * 1024))

    cost = pl.CostEstimate(
        flops=2 * b_pad * din_pad * f_pad + 2 * b_pad * f_pad * c_pad,
        transcendentals=b_pad if normalize else 0,
        bytes_accessed=(x.size * itemsize + wenc_t.size * itemsize
                        + whead_t.size * 4 + b_pad * c_pad * 4),
    )

    out = pl.pallas_call(
        kernel,
        out_shape=jax.ShapeDtypeStruct((b_pad, c_pad), jnp.float32),
        grid_spec=pltpu.PrefetchScalarGridSpec(
            num_scalar_prefetch=0,
            grid=grid,
            in_specs=[
                pl.BlockSpec((tb, tk), lambda i, k: (i, k)),        # x tile
                pl.BlockSpec((tk, f_pad), lambda i, k: (k, 0)),     # encoder weight tile
                pl.BlockSpec((1, f_pad), lambda i, k: (0, 0)),      # encoder bias
                pl.BlockSpec((f_pad, c_pad), lambda i, k: (0, 0)),  # head weight
                pl.BlockSpec((1, c_pad), lambda i, k: (0, 0)),      # head bias
            ],
            out_specs=pl.BlockSpec((tb, c_pad), lambda i, k: (i, 0)),
            scratch_shapes=[pltpu.VMEM((tb, f_pad), jnp.float32)],
        ),
        compiler_params=pltpu.CompilerParams(
            dimension_semantics=("parallel", "arbitrary"),
            vmem_limit_bytes=vmem_limit,
        ),
        cost_estimate=cost,
    )(x, wenc_t, benc, whead_t, bhead)

    return out[:B, :num_classes]


def _reference(images, w_enc, b_enc, w_head, b_head, normalize=True):
    B = images.shape[0]
    feat = images.reshape(B, -1).astype(jnp.float32) @ w_enc.T + b_enc
    if normalize:
        feat = feat / jnp.linalg.norm(feat, axis=-1, keepdims=True)
    return feat @ w_head.T + b_head


if __name__ == "__main__":
    key = jax.random.PRNGKey(0)
    k_img, k_enc, k_head = jax.random.split(key, 3)

    # small shapes consistent with the module
    B, C, H, W = 2, 4, 16, 16
    feature_dim, num_classes = 32, 8
    d_in = C * H * W

    images = jax.random.normal(k_img, (B, C, H, W), dtype=jnp.float32)

    # synthetic backbone (encode_image) parameters — deterministic
    w_enc = 0.02 * jax.random.normal(k_enc, (feature_dim, d_in), dtype=jnp.float32)
    b_enc = jnp.zeros((feature_dim,), dtype=jnp.float32)

    # classification_head init mirrors the PyTorch __init__ path with initial_weights=None:
    # kaiming_uniform_(a=sqrt(5)) => U(-1/sqrt(fan_in), 1/sqrt(fan_in)); bias = zeros.
    bound = 1.0 / math.sqrt(feature_dim)
    w_head = jax.random.uniform(k_head, (num_classes, feature_dim),
                                minval=-bound, maxval=bound, dtype=jnp.float32)
    b_head = jnp.zeros((num_classes,), dtype=jnp.float32)

    # f32 compute path (exercises the tiled-K accumulation), tight tolerance.
    params32, meta32 = prepare_params(w_enc, b_enc, w_head, b_head,
                                      compute_dtype=jnp.float32, block_k=256)
    for norm in (True, False):
        ref = _reference(images, w_enc, b_enc, w_head, b_head, normalize=norm)
        out32 = jax.block_until_ready(
            model_wrapper_forward(images, params32, meta32, normalize=norm))
        assert out32.shape == (B, num_classes)
        assert jnp.allclose(out32, ref, atol=1e-4, rtol=1e-4), \
            f"f32 path mismatch vs reference (normalize={norm})"

    # bf16 streamed-weight path (production configuration), bf16-appropriate tolerance.
    ref = _reference(images, w_enc, b_enc, w_head, b_head, normalize=True)
    params16, meta16 = prepare_params(w_enc, b_enc, w_head, b_head,
                                      compute_dtype=jnp.bfloat16, block_k=256)
    out16 = jax.block_until_ready(
        model_wrapper_forward(images, params16, meta16, normalize=True))
    assert out16.shape == (B, num_classes)
    assert jnp.allclose(out16, ref, atol=5e-2, rtol=5e-2), "bf16 path mismatch vs reference"

    print("KERNEL_OK")
</pallas_src>

<mosaic_0001>
module attributes {stable_mosaic.version = 11 : i64} {
  func.func @_model_wrapper_kernel(%arg0: i32, %arg1: i32, %arg2: memref<8x256xf32, #tpu.memory_space<vmem>>, %arg3: memref<256x128xf32, #tpu.memory_space<vmem>>, %arg4: memref<1x128xf32, #tpu.memory_space<vmem>>, %arg5: memref<128x128xf32, #tpu.memory_space<vmem>>, %arg6: memref<1x128xf32, #tpu.memory_space<vmem>>, %arg7: memref<8x128xf32, #tpu.memory_space<vmem>>, %arg8: memref<8x128xf32, #tpu.memory_space<vmem>>) attributes {dimension_semantics = [#tpu.dimension_semantics<parallel>, #tpu.dimension_semantics<arbitrary>], iteration_bounds = array<i64: 1, 4>, scalar_prefetch = 0 : i64, scratch_operands = 1 : i64, tpu.core_type = #tpu.core_type<tc>, window_params = [{transform_indices = @transform_0, window_bounds = array<i64: 8, 256>}, {transform_indices = @transform_1, window_bounds = array<i64: 256, 128>}, {pipeline_mode = #tpu.pipeline_mode<synchronous>, transform_indices = @transform_2, window_bounds = array<i64: 1, 128>}, {pipeline_mode = #tpu.pipeline_mode<synchronous>, transform_indices = @transform_3, window_bounds = array<i64: 128, 128>}, {pipeline_mode = #tpu.pipeline_mode<synchronous>, transform_indices = @transform_4, window_bounds = array<i64: 1, 128>}, {transform_indices = @transform_5, window_bounds = array<i64: 8, 128>}]} {
    %c0_i32 = arith.constant 0 : i32
    %0 = arith.cmpi eq, %arg1, %c0_i32 : i32
    %1 = arith.extui %0 : i1 to i32
    %c0_i32_0 = arith.constant 0 : i32
    %2 = arith.cmpi ne, %1, %c0_i32_0 : i32
    scf.if %2 {
      %cst_9 = arith.constant 0.000000e+00 : f32
      %12 = vector.broadcast %cst_9 : f32 to vector<8x128xf32>
      %c0_10 = arith.constant 0 : index
      %c0_11 = arith.constant 0 : index
      %13 = vector.load %arg8[%c0_10, %c0_11] : memref<8x128xf32, #tpu.memory_space<vmem>>, vector<8x128xf32>
      tpu.vector_store %arg8[%c0_10, %c0_11], %12 {strides = array<i32>} : memref<8x128xf32, #tpu.memory_space<vmem>>, vector<8x128xf32>,
    } else {
    }
    %c0 = arith.constant 0 : index
    %c0_1 = arith.constant 0 : index
    %3 = vector.load %arg8[%c0, %c0_1] : memref<8x128xf32, #tpu.memory_space<vmem>>, vector<8x128xf32>
    %c0_2 = arith.constant 0 : index
    %c0_3 = arith.constant 0 : index
    %4 = vector.load %arg2[%c0_2, %c0_3] : memref<8x256xf32, #tpu.memory_space<vmem>>, vector<8x256xf32>
    %c0_4 = arith.constant 0 : index
    %c0_5 = arith.constant 0 : index
    %5 = vector.load %arg3[%c0_4, %c0_5] : memref<256x128xf32, #tpu.memory_space<vmem>>, vector<256x128xf32>
    %cst = arith.constant dense<0.000000e+00> : vector<8x128xf32>
    %6 = tpu.matmul %4, %5, %cst {dimension_numbers = #tpu.dot_dimension_numbers<[1], [0], [0], [1], [0, 0, 1, 1], [], []>} : vector<8x256xf32>, vector<256x128xf32>, vector<8x128xf32> -> vector<8x128xf32>
    %7 = arith.addf %3, %6 : vector<8x128xf32>
    %c0_6 = arith.constant 0 : index
    %c0_7 = arith.constant 0 : index
    %8 = vector.load %arg8[%c0_6, %c0_7] : memref<8x128xf32, #tpu.memory_space<vmem>>, vector<8x128xf32>
    tpu.vector_store %arg8[%c0_6, %c0_7], %7 {strides = array<i32>} : memref<8x128xf32, #tpu.memory_space<vmem>>, vector<8x128xf32>,
    %c3_i32 = arith.constant 3 : i32
    %9 = arith.cmpi eq, %arg1, %c3_i32 : i32
    %10 = arith.extui %9 : i1 to i32
    %c0_i32_8 = arith.constant 0 : i32
    %11 = arith.cmpi ne, %10, %c0_i32_8 : i32
    scf.if %11 {
      %c0_9 = arith.constant 0 : index
      %c0_10 = arith.constant 0 : index
      %12 = vector.load %arg8[%c0_9, %c0_10] : memref<8x128xf32, #tpu.memory_space<vmem>>, vector<8x128xf32>
      %c0_11 = arith.constant 0 : index
      %c0_12 = arith.constant 0 : index
      %13 = vector.load %arg4[%c0_11, %c0_12] : memref<1x128xf32, #tpu.memory_space<vmem>>, vector<1x128xf32>
      %14 = vector.broadcast %13 : vector<1x128xf32> to vector<8x128xf32>
      %15 = arith.addf %12, %14 : vector<8x128xf32>
      %16 = arith.mulf %15, %15 : vector<8x128xf32>
      %cst_13 = arith.constant dense<0.000000e+00> : vector<8xf32>
      %17 = vector.multi_reduction <add>, %16, %cst_13 [1] : vector<8x128xf32> to vector<8xf32>
      %18 = vector.shape_cast %17 : vector<8xf32> to vector<8x1xf32>
      %cst_14 = arith.constant 9.99999996E-13 : f32
      %19 = vector.broadcast %cst_14 : f32 to vector<8x1xf32>
      %20 = arith.maximumf %18, %19 : vector<8x1xf32>
      %21 = math.rsqrt %20 : vector<8x1xf32>
      %22 = vector.broadcast %21 : vector<8x1xf32> to vector<8x128xf32>
      %23 = arith.mulf %15, %22 : vector<8x128xf32>
      %c0_15 = arith.constant 0 : index
      %c0_16 = arith.constant 0 : index
      %24 = vector.load %arg5[%c0_15, %c0_16] : memref<128x128xf32, #tpu.memory_space<vmem>>, vector<128x128xf32>
      %cst_17 = arith.constant dense<0.000000e+00> : vector<8x128xf32>
      %25 = tpu.matmul %23, %24, %cst_17 {dimension_numbers = #tpu.dot_dimension_numbers<[1], [0], [0], [1], [0, 0, 1, 1], [], []>} : vector<8x128xf32>, vector<128x128xf32>, vector<8x128xf32> -> vector<8x128xf32>
      %c0_18 = arith.constant 0 : index
      %c0_19 = arith.constant 0 : index
      %26 = vector.load %arg6[%c0_18, %c0_19] : memref<1x128xf32, #tpu.memory_space<vmem>>, vector<1x128xf32>
      %27 = vector.broadcast %26 : vector<1x128xf32> to vector<8x128xf32>
      %28 = arith.addf %25, %27 : vector<8x128xf32>
      %c0_20 = arith.constant 0 : index
      %c0_21 = arith.constant 0 : index
      %29 = vector.load %arg7[%c0_20, %c0_21] : memref<8x128xf32, #tpu.memory_space<vmem>>, vector<8x128xf32>
      tpu.vector_store %arg7[%c0_20, %c0_21], %28 {strides = array<i32>} : memref<8x128xf32, #tpu.memory_space<vmem>>, vector<8x128xf32>,
    } else {
    }
    return
  }
  func.func @transform_0(%arg0: i32, %arg1: i32) -> (i32, i32) {
    %c0_i32 = arith.constant 0 : i32
    return %arg0, %arg1 : i32, i32
  }
  func.func @transform_1(%arg0: i32, %arg1: i32) -> (i32, i32) {
    %c0_i32 = arith.constant 0 : i32
    %c0_i32_0 = arith.constant 0 : i32
    return %arg1, %c0_i32 : i32, i32
  }
  func.func @transform_2(%arg0: i32, %arg1: i32) -> (i32, i32) {
    %c0_i32 = arith.constant 0 : i32
    %c0_i32_0 = arith.constant 0 : i32
    %c0_i32_1 = arith.constant 0 : i32
    return %c0_i32, %c0_i32_0 : i32, i32
  }
  func.func @transform_3(%arg0: i32, %arg1: i32) -> (i32, i32) {
    %c0_i32 = arith.constant 0 : i32
    %c0_i32_0 = arith.constant 0 : i32
    %c0_i32_1 = arith.constant 0 : i32
    return %c0_i32, %c0_i32_0 : i32, i32
  }
  func.func @transform_4(%arg0: i32, %arg1: i32) -> (i32, i32) {
    %c0_i32 = arith.constant 0 : i32
    %c0_i32_0 = arith.constant 0 : i32
    %c0_i32_1 = arith.constant 0 : i32
    return %c0_i32, %c0_i32_0 : i32, i32
  }
  func.func @transform_5(%arg0: i32, %arg1: i32) -> (i32, i32) {
    %c0_i32 = arith.constant 0 : i32
    %c0_i32_0 = arith.constant 0 : i32
    return %arg0, %c0_i32 : i32, i32
  }
}

</mosaic_0001>

<bundles_post_ra>
// kernel: tpu_custom_call.1
= control target key start
LH: loop header
LB: loop body
LE: loop exit
PB: predicated region body
PF: predicated region fallthrough
CT: control target
= control target key end

     0   :  { %10 = vsyncpa [#allocation4], 0  ;;  %s1378_s0 = inlined_call_operand.hbm [shape: f32[8,1024], index: 0, kind: input, shape index: {}]   ;;  %s1379_s1 = inlined_call_operand.hbm [shape: f32[1024,128], index: 1, kind: input, shape index: {}]   ;;  %s1380_s2 = inlined_call_operand.vmem [shape: f32[1,128], index: 2, kind: input, shape index: {}]   ;;  %s1381_s3 = inlined_call_operand.hbm [shape: f32[128,128], index: 3, kind: input, shape index: {}]   ;;  %s1382_s4 = inlined_call_operand.vmem [shape: f32[1,128], index: 4, kind: input, shape index: {}]   ;;  %s1383_s5 = inlined_call_operand.hbm [shape: f32[8,128], index: 5, kind: output, shape index: {}]  }
   0x1   :  { %12 = vsyncpa [#allocation4 + $0x1], 0 }
   0x2   :  { %13 = vsyncpa [#allocation7], 0 }
   0x3   :  { %15 = vsyncpa [#allocation7 + $0x1], 0 }
   0x4   :  { %16 = vsyncpa [#allocation5], 0  ;;  %s1107_s18 = smov 0   ;;  %s1109_s19 = smov 0  }
   0x5   :  { %s1111_s20 = smov 0   ;;  %s1113_s21 = smov 0  }
   0x6   :  { %s1115_s22 = smov 0   ;;  %s1117_s23 = smov 0  }
   0x7 LB: > { %s1136_s24 = sadd.s32 4294967295, %s1065_s23   ;;  %p56_p0 = scmp.ne.s32.totalorder %s1049_s19, %s1045_s18  ;;  %s1065_s23 = sphi %s1117_s23, %s22_s23   ;;  %s1061_s22 = sphi %s1115_s22, %s1403_s22   ;;  %s1057_s21 = sphi %s1113_s21, %s1402_s21   ;;  %s1053_s20 = sphi %s1111_s20, %s1401_s20   ;;  %s1049_s19 = sphi %s1109_s19, %s1400_s19   ;;  %s1045_s18 = sphi %s1107_s18, %s1399_s18  }
   0x8   : > { %p1384_p1 = scmp.eq.s32.totalorder %s1136_s24, 0  ;;  %p637_p2 = scmp.ge.s32.totalorder %s1065_s23, 1 }
   0x9   : > { %p182_p3 = scmp.lt.s32.totalorder %s1065_s23, 5  ;;  %s1067_s27 = smov [#allocation8]  }
   0xa   : > { %p1144_p4 = por %p1384_p1, %p56_p0  ;;  %s197_s28 = sshll.u32 %s1067_s27, 4  ;;  %s198_s28 = int_to_ptr.vmem [resolvable:$true] %s197_s28 }
   0xb   : > { %p1148_p5 = pnand %p637_p2, %p182_p3  ;;  %s31_s30 = sadd.s32 1, %s1061_s22 }
   0xc   : > { %s1389_s25 = scalar_select %p1144_p4, 1, 0 }
   0xd   : > { %s1390_s26 = scalar_select %p1148_p5, 1, 0 }
   0xe   : > { %p815_p6 = pneg %p1148_p5  ;;  %s889_s8 = scalar_lea.hbm %s1381_s3, 2048 }
   0xf   : > { %p890_p8 = scmp.ne.s32.totalorder %s1381_s3, %s889_s8  ;;  %p896_p12 = scmp.lt.u32.totalorder %s889_s8, %s1381_s3 }
  0x10   : > { %p1156_p7 = pnand %p815_p6, %p1384_p1 }
  0x12   : > { %p891_p9 = pneg %p1156_p7 }
  0x14   : > { %p892_p10 = pnand %p891_p9, %p890_p8 }
  0x16   : > { %p893_p11 = pneg %p892_p10 }
  0x18   : > { %p898_p13 = pnand %p896_p12, %p893_p11 }
  0x1a   : > { %901 = shalt.err (!%p898_p13)
}
  0x1b   : > { %s902_s13 = scalar_lea.vmem %s198_s28, 2048  ;;  %p910_p6 = scmp.lt.s32.totalorder %s198_s28, %s198_s28 }
  0x1c   : > { %p903_p0 = scmp.ne.s32.totalorder %s198_s28, %s902_s13  ;;  %p911_p1 = scmp.lt.s32.totalorder %s902_s13, %s902_s13 }
  0x1e   : > { %p905_p2 = pnand %p903_p0, %p891_p9  ;;  %p912_p4 = por %p911_p1, %p910_p6 }
  0x20   : > { %p906_p3 = pneg %p905_p2 }
  0x22   : > { %p913_p5 = pnand %p912_p4, %p906_p3 }
  0x24   : > { %916 = shalt.err (!%p913_p5)
}
  0x25   : > { %s1387_s14 = smov 128   ;;  %s1388_s15 = smov 8  }
  0x26   : > { %818 = dma.hbm_to_vmem [thread:$0]  (!%p1156_p7), %s1381_s3, 2048, %s198_s28, [#allocation7], %s1387_s14, %s1387_s14, %s1388_s15  }
  0x27   : > { %p32_p1 = scmp.ge.s32.totalorder %s31_s30, 4  ;;  %s43_s18 = sadd.s32 1, %s1053_s20 }
  0x28   : > { %p50_p4 = scmp.ne.s32.totalorder %s1053_s20, %s1049_s19  ;;  %p51_p5 = scmp.eq.s32.totalorder %s1065_s23, 0 }
  0x29   : > { %s1405_s30 = smov (%p32_p1, %s31_s30), 0  ;;  %p827_p9 = scmp.lt.s32.totalorder %s1065_s23, 4 }
  0x2a   : > { %p52_p8 = por %p51_p5, %p50_p4  ;;  %s39_s27 = ssub.s32 %s1061_s22, %s1405_s30 }
  0x2b   : > { %s1190_s6 = sand.u32 1, %s1053_s20   ;;  %p41_p10 = scmp.eq.s32.totalorder %s39_s27, 0 }
  0x2c   : > { %s640_s29 = sshll.u32 %s1190_s6, 4  ;;  %s658_s7 = sshll.u32 %s1061_s22, 8 }
  0x2d   : > { %s1195_s8 = scalar_select %p41_p10, %s1053_s20, %s43_s18  }
  0x2e   : > { %s1200_s10 = scalar_lea.hbm %s1378_s0, %s658_s7  ;;  %s218_s11 = scalar_lea.vmem [#allocation3], %s640_s29 }
  0x2f   : > { %s228_s12 = sshll.u32 %s218_s11, 4  ;;  %p1202_p7 = pnand %p827_p9, %p52_p8  ;;  %s1206_s12 = int_to_ptr.vmem [resolvable:$true] %s228_s12 }
  0x30   : > { %s643_s16 = sshll.u32 %s1190_s6, 8  ;;  %s215_s17 = scalar_lea.sflag [#allocation4], %s1190_s6 }
  0x31   : > { %s917_s18 = scalar_lea.hbm %s1200_s10, 256  ;;  %p919_p12 = pneg %p1202_p7 }
  0x32   : > { %p918_p11 = scmp.ne.s32.totalorder %s1200_s10, %s917_s18  ;;  %s922_s7 = scalar_lea.hbm %s1378_s0, 1024 }
  0x33   : > { %p923_p2 = scmp.lt.u32.totalorder %s1200_s10, %s1378_s0  ;;  %p924_p3 = scmp.lt.u32.totalorder %s922_s7, %s917_s18 }
  0x34   : > { %p920_p13 = pnand %p919_p12, %p918_p11  ;;  %p926_p1 = scmp.lt.u32.totalorder %s917_s18, %s1200_s10 }
  0x35   : > { %p925_p6 = por %p924_p3, %p923_p2 }
  0x36   : > { %p921_p0 = pneg %p920_p13 }
  0x37   : > { %p927_p4 = por %p926_p1, %p925_p6 }
  0x39   : > { %p928_p5 = pnand %p927_p4, %p921_p0 }
  0x3b   : > { %931 = shalt.err (!%p928_p5)
}
  0x3c   : > { %s932_s11 = scalar_lea.vmem %s1206_s12, 256  ;;  %s1070_s27 = smov [#allocation3]  }
  0x3d   : > { %p933_p8 = scmp.ne.s32.totalorder %s1206_s12, %s932_s11  ;;  %s937_s29 = sshll.u32 %s1070_s27, 4  ;;  %s938_s29 = int_to_ptr.vmem [resolvable:$false] %s937_s29 }
  0x3e   : > { %s939_s28 = scalar_lea.vmem %s938_s29, 512  ;;  %p940_p11 = scmp.lt.s32.totalorder %s1206_s12, %s938_s29 }
  0x3f   : > { %p935_p9 = pnand %p933_p8, %p919_p12  ;;  %p941_p13 = scmp.lt.s32.totalorder %s939_s28, %s932_s11 }
  0x41   : > { %p936_p10 = pneg %p935_p9  ;;  %p942_p2 = por %p941_p13, %p940_p11 }
  0x43   : > { %p943_p3 = pnand %p942_p2, %p936_p10 }
  0x45   : > { %946 = shalt.err (!%p943_p3)
}
  0x46   : > { %822 = dma.hbm_to_vmem [thread:$0]  (!%p1202_p7), %s1200_s10, 256, %s1206_s12, %s215_s17  }
  0x47   : > { %s659_s18 = sshll.u32 %s1061_s22, 12  ;;  %s239_s7 = scalar_lea.vmem [#allocation6], %s643_s16 }
  0x48   : > { %s246_s9 = sshll.u32 %s239_s7, 4  ;;  %s235_s27 = sand.u32 1, %s1065_s23   ;;  %s1238_s9 = int_to_ptr.vmem [resolvable:$true] %s246_s9 }
  0x49   : > { %s1244_s28 = scalar_lea.hbm %s1379_s1, %s659_s18  ;;  %s1246_s14 = scalar_lea.sflag [#allocation7], %s235_s27 }
  0x4a   : > { %s947_s15 = scalar_lea.hbm %s1244_s28, 4096  ;;  %s952_s12 = scalar_lea.hbm %s1379_s1, 16384 }
  0x4b   : > { %p948_p0 = scmp.ne.s32.totalorder %s1244_s28, %s947_s15  ;;  %p953_p4 = scmp.lt.u32.totalorder %s1244_s28, %s1379_s1 }
  0x4c   : > { %p954_p5 = scmp.lt.u32.totalorder %s952_s12, %s947_s15  ;;  %p956_p9 = scmp.lt.u32.totalorder %s947_s15, %s1244_s28 }
  0x4d   : > { %p950_p6 = pnand %p948_p0, %p919_p12 }
  0x4e   : > { %p955_p8 = por %p954_p5, %p953_p4 }
  0x4f   : > { %p951_p1 = pneg %p950_p6 }
  0x50   : > { %p957_p10 = por %p956_p9, %p955_p8 }
  0x52   : > { %p958_p11 = pnand %p957_p10, %p951_p1 }
  0x54   : > { %961 = shalt.err (!%p958_p11)
}
  0x55   : > { %s962_s18 = scalar_lea.vmem %s1238_s9, 4096  ;;  %s1071_s7 = smov [#allocation6]  }
  0x56   : > { %p963_p13 = scmp.ne.s32.totalorder %s1238_s9, %s962_s18  ;;  %s967_s27 = sshll.u32 %s1071_s7, 4  ;;  %s968_s27 = int_to_ptr.vmem [resolvable:$false] %s967_s27 }
  0x57   : > { %s969_s11 = scalar_lea.vmem %s968_s27, 8192  ;;  %p970_p0 = scmp.lt.s32.totalorder %s1238_s9, %s968_s27 }
  0x58   : > { %p965_p2 = pnand %p963_p13, %p919_p12  ;;  %p971_p6 = scmp.lt.s32.totalorder %s969_s11, %s962_s18 }
  0x5a   : > { %p966_p3 = pneg %p965_p2  ;;  %p972_p4 = por %p971_p6, %p970_p0 }
  0x5c   : > { %p973_p5 = pnand %p972_p4, %p966_p3 }
  0x5e   : > { %976 = shalt.err (!%p973_p5)
}
  0x5f   : > { %s1393_s15 = smov 8   ;;  %s1394_s29 = smov 128  }
  0x60   : > { %825 = dma.hbm_to_vmem [thread:$0]  (!%p1202_p7), %s1244_s28, 4096, %s1238_s9, %s1246_s14, %s1394_s29, %s1394_s29, %s1393_s15  }
  0x61   : > { %p1395_p12 = scmp.ne.s32.totalorder %s1390_s26, 0 }
  0x62   : > { %s260_s6 = sand.u32 (!%p1395_p12), 1, %s1049_s19   ;;  %p1396_p1 = scmp.ne.s32.totalorder (!%p1395_p12), %s1389_s25, 0 }
  0x63   : > { %258 = sbr.rel (%p1395_p12) target bundleno = 783 (0x30f), region = 40  ;;  %s647_s10 = sshll.u32 (!%p1395_p12), %s260_s6, 4 }
  0x64   : > { %s261_s12 = scalar_lea.sflag (!%p1395_p12), [#allocation4], %s260_s6  ;;  %s1278_s16 = scalar_lea.vmem (!%p1395_p12), [#allocation3], %s647_s10 }
  0x6a   : > { %1028 = dma.done.wait (%p1396_p1), %s261_s12, 256  }
  0x6b   : > { %1030 = vsyncadd (%p1396_p1), %s261_s12, 4294967040  ;;  %s269_s13 = sand.u32 1, %s1136_s24   ;;  %s648_s17 = sshll.u32 %s260_s6, 8 }
  0x6c   : > { %s270_s14 = scalar_lea.sflag [#allocation7], %s269_s13  ;;  %s1285_s9 = scalar_lea.vmem [#allocation6], %s648_s17 }
  0x6d   : > { %1032 = dma.done.wait (%p1396_p1), %s270_s14, 4096  }
  0x6e   : > { %1034 = vsyncadd (%p1396_p1), %s270_s14, 4294963200  ;;  %p1397_p7 = scmp.eq.s32.totalorder %s1136_s24, 0 }
  0x70   : > { %1036 = dma.done.wait (%p1397_p7), [#allocation7], 2048   ;;  %p1398_p8 = pmov %p1397_p7 }
  0x71   : > { %p650_p9 = scmp.ne.s32.totalorder %s1057_s21, 0 }
  0x72   : > { %1038 = vsyncadd (%p1398_p8), [#allocation7], 4294965248  ;;  %v1072_v0 = vmov (!%p650_p9), 0.0  }
  0x73   : > { %309 = sbr.rel (%p650_p9) target bundleno = 122 (0x7a), region = 56  ;;  %310 = vst [vmem:[#allocation2] sm:$0xff] (!%p650_p9), %v1072_v0 }
  0x7a PF: > { %v330_v1 = vld [vmem:[%s1285_s9 + $0x80] sm:$0xff]  ;;  %v331_v2 = vld [vmem:[%s1285_s9 + $0x88] sm:$0xff]  ;;  %v332_v6 = vld [vmem:[%s1285_s9 + $0x90] sm:$0xff]  ;;  %p651_p10 = scmp.ne.s32.totalorder %s1057_s21, 3 }
  0x7b   : > { %v314_v3 = vld [vmem:[%s1285_s9] sm:$0xff]  ;;  %v747_v4 = vpack.c.bf16 %v331_v2, %v330_v1  ;;  %v315_v5 = vld [vmem:[%s1285_s9 + $0x8] sm:$0xff]  ;;  %v333_v7 = vld [vmem:[%s1285_s9 + $0x98] sm:$0xff]  ;;  %v1073_v60 = vmov (!%p651_p10), 0.0|0.0   ;;  %vm1074_vm0 = vmmov (!%p651_p10), 0  }
  0x7c   : > { %v749_v8 = vpack.c.bf16 %v315_v5, %v314_v3  ;;  %v751_v9 = vpack.c.bf16 %v333_v7, %v332_v6  ;;  %v316_v10 = vld [vmem:[%s1285_s9 + $0x10] sm:$0xff]  ;;  %v317_v11 = vld [vmem:[%s1285_s9 + $0x18] sm:$0xff]  ;;  %v334_v12 = vld [vmem:[%s1285_s9 + $0xa0] sm:$0xff] }
  0x7d   : > { %748 = vmatprep.subr.bf16.mxu0 %v747_v4  ;;  %v335_v13 = vld [vmem:[%s1285_s9 + $0xa8] sm:$0xff]  ;;  %v753_v14 = vpack.c.bf16 %v317_v11, %v316_v10  ;;  %v318_v16 = vld [vmem:[%s1285_s9 + $0x20] sm:$0xff]  ;;  %v336_v18 = vld [vmem:[%s1285_s9 + $0xb0] sm:$0xff] }
  0x7e   : > { %750 = vmatpush3.bf16.msra.mxu0 %v749_v8  ;;  %v755_v15 = vpack.c.bf16 %v335_v13, %v334_v12  ;;  %v319_v17 = vld [vmem:[%s1285_s9 + $0x28] sm:$0xff]  ;;  %v337_v19 = vld [vmem:[%s1285_s9 + $0xb8] sm:$0xff]  ;;  %v320_v22 = vld [vmem:[%s1285_s9 + $0x30] sm:$0xff] }
  0x7f   : > { %752 = vmatprep.subr.bf16.mxu0 %v751_v9  ;;  %v757_v20 = vpack.c.bf16 %v319_v17, %v318_v16  ;;  %v759_v21 = vpack.c.bf16 %v337_v19, %v336_v18  ;;  %v321_v23 = vld [vmem:[%s1285_s9 + $0x38] sm:$0xff]  ;;  %v338_v24 = vld [vmem:[%s1285_s9 + $0xc0] sm:$0xff]  ;;  %v339_v25 = vld [vmem:[%s1285_s9 + $0xc8] sm:$0xff]  ;;  %v1075_v17 = vmov (!%p651_p10), 0.0  }
  0x80   : > { %v313_v26 = vld [vmem:[%s1278_s16 + $0x8] sm:$0xff]  ;;  %v761_v27 = vpack.c.bf16 %v321_v23, %v320_v22  ;;  %v763_v28 = vpack.c.bf16 %v339_v25, %v338_v24  ;;  %v322_v29 = vld [vmem:[%s1285_s9 + $0x40] sm:$0xff]  ;;  %v340_v31 = vld [vmem:[%s1285_s9 + $0xd0] sm:$0xff] }
  0x81   : > { %410 = vmatprep.mubr.f32.mxu0 %v313_v26  ;;  %v323_v30 = vld [vmem:[%s1285_s9 + $0x48] sm:$0xff]  ;;  %v341_v32 = vld [vmem:[%s1285_s9 + $0xd8] sm:$0xff]  ;;  %v324_v35 = vld [vmem:[%s1285_s9 + $0x50] sm:$0xff] }
  0x82   : > { %754 = vmatpush3.bf16.msra.mxu0 %v753_v14  ;;  %v765_v33 = vpack.c.bf16 %v323_v30, %v322_v29  ;;  %v767_v34 = vpack.c.bf16 %v341_v32, %v340_v31  ;;  %v325_v36 = vld [vmem:[%s1285_s9 + $0x58] sm:$0xff]  ;;  %v342_v37 = vld [vmem:[%s1285_s9 + $0xe0] sm:$0xff]  ;;  %v343_v38 = vld [vmem:[%s1285_s9 + $0xe8] sm:$0xff] }
  0x83   : > { %756 = vmatprep.subr.bf16.mxu0 %v755_v15  ;;  %v769_v39 = vpack.c.bf16 %v325_v36, %v324_v35  ;;  %v771_v40 = vpack.c.bf16 %v343_v38, %v342_v37  ;;  %v326_v41 = vld [vmem:[%s1285_s9 + $0x60] sm:$0xff]  ;;  %v327_v42 = vld [vmem:[%s1285_s9 + $0x68] sm:$0xff]  ;;  %v344_v43 = vld [vmem:[%s1285_s9 + $0xf0] sm:$0xff] }
  0x84   : > { %v345_v44 = vld [vmem:[%s1285_s9 + $0xf8] sm:$0xff]  ;;  %v773_v45 = vpack.c.bf16 %v327_v42, %v326_v41  ;;  %v328_v47 = vld [vmem:[%s1285_s9 + $0x70] sm:$0xff]  ;;  %v437_v58 = vld [vmem:[#allocation8] sm:$0xff] (!%p651_p10) }
  0x85   : > { %v775_v46 = vpack.c.bf16 %v345_v44, %v344_v43  ;;  %v329_v48 = vld [vmem:[%s1285_s9 + $0x78] sm:$0xff]  ;;  %v312_v50 = vld [vmem:[%s1278_s16] sm:$0xff]  ;;  %v438_v61 = vld [vmem:[#allocation8 + $0x8] sm:$0xff] (!%p651_p10) }
  0x86   : > { %758 = vmatpush3.bf16.msra.mxu0 %v757_v20  ;;  %v777_v49 = vpack.c.bf16 %v329_v48, %v328_v47  ;;  %v311_v52 = vld [vmem:[#allocation2] sm:$0xff]  ;;  %v439_v62 = vld [vmem:[#allocation8 + $0x10] sm:$0xff] (!%p651_p10)  ;;  %v780_v0 = vpack.c.bf16 (!%p651_p10), %v438_v61, %v437_v58  ;;  %v441_v3 = vld [vmem:[#allocation8 + $0x20] sm:$0xff] (!%p651_p10) }
  0x87   : > { %760 = vmatprep.subr.bf16.mxu0 %v759_v21  ;;  %v652_v57 = vld [vmem:[%s1380_s2] ss:$0 sm:$0xff] (!%p651_p10)  ;;  %v442_v4 = vld [vmem:[#allocation8 + $0x28] sm:$0xff] (!%p651_p10)  ;;  %v443_v6 = vld [vmem:[#allocation8 + $0x30] sm:$0xff] (!%p651_p10) }
  0x88   : > { %v440_v63 = vld [vmem:[#allocation8 + $0x18] sm:$0xff] (!%p651_p10)  ;;  %v786_v5 = vpack.c.bf16 (!%p651_p10), %v442_v4, %v441_v3  ;;  %v445_v9 = vld [vmem:[#allocation8 + $0x40] sm:$0xff] (!%p651_p10)  ;;  %v446_v10 = vld [vmem:[#allocation8 + $0x48] sm:$0xff] (!%p651_p10) }
  0x89   : > { %v783_v2 = vpack.c.bf16 (!%p651_p10), %v440_v63, %v439_v62  ;;  %v444_v7 = vld [vmem:[#allocation8 + $0x38] sm:$0xff] (!%p651_p10)  ;;  %v792_v11 = vpack.c.bf16 (!%p651_p10), %v446_v10, %v445_v9  ;;  %v447_v12 = vld [vmem:[#allocation8 + $0x50] sm:$0xff] (!%p651_p10)  ;;  %v449_v15 = vld [vmem:[#allocation8 + $0x60] sm:$0xff] (!%p651_p10) }
  0x8a   : > { %762 = vmatpush3.bf16.msra.mxu0 %v761_v27  ;;  %v789_v8 = vpack.c.bf16 (!%p651_p10), %v444_v7, %v443_v6  ;;  %v448_v13 = vld [vmem:[#allocation8 + $0x58] sm:$0xff] (!%p651_p10)  ;;  %v450_v16 = vld [vmem:[#allocation8 + $0x68] sm:$0xff] (!%p651_p10)  ;;  %v451_v19 = vld [vmem:[#allocation8 + $0x70] sm:$0xff] (!%p651_p10) }
  0x8b   : > { %764 = vmatprep.subr.bf16.mxu0 %v763_v28  ;;  %v795_v14 = vpack.c.bf16 (!%p651_p10), %v448_v13, %v447_v12  ;;  %v798_v18 = vpack.c.bf16 (!%p651_p10), %v450_v16, %v449_v15  ;;  %v452_v20 = vld [vmem:[#allocation8 + $0x78] sm:$0xff] (!%p651_p10) }
  0x8c   : > { %v801_v21 = vpack.c.bf16 (!%p651_p10), %v452_v20, %v451_v19  ;;  %v653_v26 = vld [vmem:[%s1382_s4] ss:$0 sm:$0xff] (!%p651_p10) }
  0x8e   : > { %766 = vmatpush3.bf16.msra.mxu0 %v765_v33 }
  0x8f   : > { %768 = vmatprep.subr.bf16.mxu0 %v767_v34 }
  0x92   : > { %770 = vmatpush3.bf16.msra.mxu0 %v769_v39 }
  0x93   : > { %772 = vmatprep.subr.bf16.mxu0 %v771_v40 }
  0x96   : > { %774 = vmatpush3.bf16.msra.mxu0 %v773_v45 }
  0x97   : > { %776 = vmatprep.subr.bf16.mxu0 %v775_v46 }
  0x9a   : > { %778 = vmatpush3.bf16.msra.mxu0 %v777_v49 }
  0x9b   : > { %779 = vmatprep.subr.bf16.mxu0 (!%p651_p10), %v1073_v60 }
  0x9d   : > { %411 = vmatmul.mubr.f32.vlgmr.msra.gmra.mrb[0].mxu0 %v312_v50 }
  0x9e   : > { %781 = vmatpush3.bf16.msra.mxu0 (!%p651_p10), %v780_v0  ;;  %744 = vmatprep.mubr.msk.f32.mxu0 (!%p651_p10), %vm1074_vm0, %v1075_v17 }
  0x9f   : > { %782 = vmatprep.subr.bf16.mxu0 (!%p651_p10), %v1073_v60 }
  0xa2   : > { %784 = vmatpush3.bf16.msra.mxu0 (!%p651_p10), %v783_v2 }
  0xa3   : > { %785 = vmatprep.subr.bf16.mxu0 (!%p651_p10), %v1073_v60 }
  0xa6   : > { %787 = vmatpush3.bf16.msra.mxu0 (!%p651_p10), %v786_v5 }
  0xa7   : > { %788 = vmatprep.subr.bf16.mxu0 (!%p651_p10), %v1073_v60 }
  0xaa   : > { %790 = vmatpush3.bf16.msra.mxu0 (!%p651_p10), %v789_v8 }
  0xab   : > { %791 = vmatprep.subr.bf16.mxu0 (!%p651_p10), %v1073_v60 }
  0xae   : > { %793 = vmatpush3.bf16.msra.mxu0 (!%p651_p10), %v792_v11 }
  0xaf   : > { %794 = vmatprep.subr.bf16.mxu0 (!%p651_p10), %v1073_v60 }
  0xb2   : > { %796 = vmatpush3.bf16.msra.mxu0 (!%p651_p10), %v795_v14 }
  0xb3   : > { %797 = vmatprep.subr.bf16.mxu0 (!%p651_p10), %v1073_v60 }
  0xb6   : > { %799 = vmatpush3.bf16.msra.mxu0 (!%p651_p10), %v798_v18 }
  0xb7   : > { %800 = vmatprep.subr.bf16.mxu0 (!%p651_p10), %v1073_v60 }
  0xba   : > { %802 = vmatpush3.bf16.msra.mxu0 (!%p651_p10), %v801_v21 }
 0x170   : > { %v692_v51 = vpop.f32.mrb[0].mxu0  ;;  %421 = sbr.rel (%p651_p10) target bundleno = 758 (0x2f6), region = 60 }
 0x171   : > { %v693_v53 = vpop.f32.mrb[1].mxu0 }
 0x172   : > { %v694_v54 = vadd.f32 %v693_v53, %v692_v51 }
 0x174   : > { %v416_v55 = vadd.f32 %v694_v54, %v311_v52 }
 0x176   : > { %417 = vst [vmem:[#allocation2] sm:$0xff] %v416_v55 }
 0x17d   : > { %v422_v56 = vld [vmem:[#allocation2] sm:$0xff] }
 0x17e   : > { %v430_v59 = vadd.f32 %v652_v57, %v422_v56 }
 0x180   : > { %v431_v1 = vmul.f32 %v430_v59, %v430_v59 }
 0x182   : > { %432 = vadd.xlane.f32.xlu0 %v431_v1 }
 0x20f   : > { %v433_v22 = vpop.xlane.xlu0 %432 }
 0x210   : > { %v434_v23 = vmax.f32 %v433_v22, 1e-12 }
 0x212   : > { %887 = vrsqrt.f32 %v434_v23 }
 0x21c   : > { %v888_v24 = vpop.eup %887 }
 0x21d   : > { %v436_v25 = vmul.f32 %v888_v24, %v430_v59 }
 0x21f   : > { %745 = vmatmul.mubr.f32.vlgmr.msra.gmra.mrb[0].mxu0 %v436_v25 }
 0x2f2   : > { %v526_v27 = vpop.f32.mrb[0].mxu0 }
 0x2f3   : > { %v527_v28 = vadd.f32 %v653_v26, %v526_v27  ;;  %v746_v29 = vpop.f32.mrb[1].mxu0 }
 0x2f5   : > { %530 = vst [vmem:[#allocation9] sm:$0xff] %v527_v28 }
 0x2f6 PF: > { %p829_p11 = scmp.eq.s32.totalorder %s1136_s24, 3  ;;  %s1076_s18 = smov [#allocation9]  }
 0x2f7   : > { %s540_s7 = sshll.u32 %s1076_s18, 4  ;;  %s541_s7 = int_to_ptr.vmem [resolvable:$true] %s540_s7 }
 0x2f8   : > { %s977_s27 = scalar_lea.vmem %s541_s7, 128  ;;  %p984_p0 = scmp.lt.s32.totalorder %s541_s7, %s541_s7 }
 0x2f9   : > { %p978_p13 = scmp.ne.s32.totalorder %s541_s7, %s977_s27  ;;  %p985_p6 = scmp.lt.s32.totalorder %s977_s27, %s977_s27 }
 0x2fb   : > { %p979_p2 = pnand %p978_p13, %p829_p11  ;;  %p986_p4 = por %p985_p6, %p984_p0 }
 0x2fd   : > { %p980_p3 = pneg %p979_p2 }
 0x2ff   : > { %p987_p5 = pnand %p986_p4, %p980_p3 }
 0x301   : > { %990 = shalt.err (!%p987_p5)
}
 0x302   : > { %s991_s29 = scalar_lea.hbm %s1383_s5, 128 }
 0x303   : > { %p992_p12 = scmp.ne.s32.totalorder %s1383_s5, %s991_s29  ;;  %p997_p8 = scmp.lt.u32.totalorder %s991_s29, %s1383_s5 }
 0x305   : > { %p993_p1 = pnand %p992_p12, %p829_p11 }
 0x307   : > { %p994_p7 = pneg %p993_p1 }
 0x309   : > { %p999_p9 = pnand %p997_p8, %p994_p7 }
 0x30b   : > { %1002 = shalt.err (!%p999_p9)
}
 0x30c   : > { %812 = dma.vmem_to_hbm [thread:$0]  (%p829_p11), %s541_s7, 128, %s1383_s5, [#allocation5]  }
 0x30d   : > { %1040 = dma.done.wait (%p829_p11), [#allocation5], 128  }
 0x30e   : > { %1042 = vsyncadd (%p829_p11), [#allocation5], 4294967168 }
 0x30f PF: > { %s22_s23 = sadd.s32 1, %s1065_s23   ;;  %s1399_s18 = smov %s1049_s19 }
 0x310   : > { %p19_p10 = scmp.ge.s32.totalorder %s22_s23, 6   ;;  %s1400_s19 = smov %s1053_s20 }
 0x311   : > { %s1401_s20 = smov %s1195_s8  ;;  %s1402_s21 = smov %s1061_s22 }
 0x312   : > { %s1403_s22 = smov %s1405_s30  ;;  %21 = sbr.rel (!%p19_p10) target bundleno = 7 (0x7), region = 103 }
 0x319   :  { %553 = vsyncpa [#allocation4], 1 }
 0x31a   :  { %555 = vsyncpa [#allocation4 + $0x1], 1 }
 0x31b   :  { %556 = vsyncpa [#allocation7], 1 }
 0x31c   :  { %558 = vsyncpa [#allocation7 + $0x1], 1 }
 0x31d   :  { %559 = vsyncpa [#allocation5], 1 }
 0x31e   :  { %561 = vsyncpa [#allocation5 + $0x1], 1 }

</bundles_post_ra>
